<compile_context>
chip_gen: v7x
topology: tpu7x:2x2x1
jax: 0.10.0
libtpu: 0.0.40
codegen_flags: <defaults>
</compile_context>

<pallas_src>
import functools

import jax
import jax.numpy as jnp
import numpy as np
from jax.experimental import pallas as pl
from jax.experimental.pallas import tpu as pltpu


def _global_rnn_kernel(x_ref, w_ih_ref, w_hh_ref, b_ref, w_out_ref, b_out_ref,
                       out_ref, gx_ref, *, time_chunk):
    """One grid step: shared LSTM + time-mean + per-node heads for a node tile.

    x_ref     : (T, Mt, F)     matmul dtype, rows m = n*B + b (node-major)
    w_ih_ref  : (F, 4H)        matmul dtype, gates stacked (i, f, o, g)
    w_hh_ref  : (H, 4H)        matmul dtype
    b_ref     : (1, 4H)        f32, b_ih + b_hh, same gate order
    w_out_ref : (Nt, H, Tout)  matmul dtype, per-node head (unpadded)
    b_out_ref : (Nt, 1, Tout)  f32
    out_ref   : (Nt, B, Tout)  f32
    gx_ref    : (Tc, Mt, 4H)   f32 scratch, hoisted input-projection chunk
    """
    T, Mt, F = x_ref.shape
    H4 = w_hh_ref.shape[1]
    H = H4 // 4
    Nt, B, _ = out_ref.shape
    Tc = time_chunk
    n_chunks = T // Tc

    w_ih = w_ih_ref[...]
    w_hh = w_hh_ref[...]
    b_row = b_ref[...]                                   # (1, 4H)

    # The (T, Mt, F) -> (Tc*Mt, F) leading-dim collapse is a layout no-op only
    # when Mt fills whole sublane tiles for this dtype; otherwise fall back to
    # a per-timestep projection loop (still hoisted out of the recurrence).
    tile_rows = 8 * 4 // jnp.dtype(x_ref.dtype).itemsize     # 8 f32 / 16 bf16
    fused_proj = (Mt % tile_rows == 0)
    unroll = True if Tc <= 16 else 4

    if not fused_proj:
        # Hoisted once; JAX does not CSE broadcast_in_dim inside loops.
        bias_rows = jnp.broadcast_to(b_row, (Mt, H4))

    def project_chunk(t0):
        if fused_proj:
            # One big MXU push for the dependence-free part of the work.
            xc = x_ref[pl.ds(t0, Tc)].reshape(Tc * Mt, F)
            gx = jnp.dot(xc, w_ih, preferred_element_type=jnp.float32) + b_row
            gx_ref[...] = gx.reshape(Tc, Mt, H4)
        else:
            def proj_t(t, c):
                gx_ref[t] = (jnp.dot(x_ref[t0 + t], w_ih,
                                     preferred_element_type=jnp.float32)
                             + bias_rows)
                return c
            jax.lax.fori_loop(0, Tc, proj_t, 0, unroll=unroll)

    def step(t, carry):
        # Serial chain per timestep: only h @ W_hh + the elementwise update.
        h, c, s = carry
        gates = gx_ref[t] + jnp.dot(h.astype(w_hh.dtype), w_hh,
                                    preferred_element_type=jnp.float32)
        # TODO(synk): v6e micro-opt - lane-align the f/o/g slabs with i via
        # pltpu.roll (XLU slot) instead of sub-vreg lane slices once Mt is big.
        ifo = jax.nn.sigmoid(gates[:, :3 * H])           # i, f, o in one slab
        g_gate = jnp.tanh(gates[:, 3 * H:])
        i_gate = ifo[:, :H]
        f_gate = ifo[:, H:2 * H]
        o_gate = ifo[:, 2 * H:]
        c_new = f_gate * c + i_gate * g_gate
        h_new = o_gate * jnp.tanh(c_new)
        return h_new, c_new, s + h_new

    def run_chunk(ci, carry):
        t0 = ci * Tc if isinstance(ci, int) else pl.multiple_of(ci * Tc, Tc)
        project_chunk(t0)
        return jax.lax.fori_loop(0, Tc, step, carry, unroll=unroll)

    zeros = jnp.zeros((Mt, H), jnp.float32)
    init = (zeros, zeros, zeros)
    if n_chunks == 1:
        carry = run_chunk(0, init)
    else:
        carry = jax.lax.fori_loop(0, n_chunks, run_chunk, init)
    mean_h = carry[2] * (1.0 / T)                        # == hid.mean(dim=0)

    # Per-node heads on unpadded (H, Tout) weights; the store is masked when
    # Tout < 128 lanes but the HBM traffic is only the real data.
    # TODO(synk): for very large node tiles, batch this as a single
    # (Mt, H) @ (H, Nt*Tout) matmul + block-diagonal extract.
    for n in range(Nt):                                  # Nt kept modest by tiling
        h_n = mean_h[n * B:(n + 1) * B, :].astype(w_out_ref.dtype)
        out_ref[n] = (jnp.dot(h_n, w_out_ref[n],
                              preferred_element_type=jnp.float32)
                      + b_out_ref[n])


def _ceil_to(x, m):
    return ((x + m - 1) // m) * m


def _vmem_capacity_bytes(default=64 * 1024 * 1024):
    """Physical VMEM per core; generation-aware when the query is available."""
    try:
        info = pltpu.get_tpu_info()
    except Exception:
        return default
    for name in ("vmem_capacity_bytes", "vmem_size_bytes", "vmem_bytes"):
        v = getattr(info, name, None)
        try:
            v = int(v)
        except (TypeError, ValueError):
            continue
        if v > 0:
            return v
    return default


def _vmem_bytes(node_tile, time_chunk, T, B, F, H, Tout, isz, sublane):
    """Tile-padded VMEM footprint of one grid step (buffers + scratch)."""
    Mt = node_tile * B
    H4 = 4 * H
    lane = 128
    # x tile, double-buffered; the F<128 last dim lane-pads to 128 in VMEM.
    x_tile = 2 * T * _ceil_to(Mt, sublane) * _ceil_to(F, lane) * isz
    # gx scratch (f32) + headroom for the projection matmul temporary.
    gx = 2 * time_chunk * _ceil_to(Mt, 8) * H4 * 4
    w_ih = 2 * _ceil_to(F, sublane) * _ceil_to(H4, lane) * isz
    w_hh = 2 * _ceil_to(H, sublane) * _ceil_to(H4, lane) * isz
    bias = 2 * 8 * lane * 4
    w_out = 2 * node_tile * _ceil_to(H, sublane) * _ceil_to(Tout, lane) * isz
    b_out = 2 * node_tile * 8 * _ceil_to(Tout, lane) * 4
    out_t = 2 * node_tile * _ceil_to(B, 8) * _ceil_to(Tout, lane) * 4
    state = 8 * _ceil_to(Mt, 8) * H4 * 4        # h/c/sum/gates live values
    return x_tile + gx + w_ih + w_hh + bias + w_out + b_out + out_t + state


def _pick_tiling(N, B, T, F, H, Tout, isz, sublane, budget):
    """Pick (node_tile, time_chunk, vmem_bytes) under the padded-VMEM budget.

    Preference: (a) fits in VMEM, (b) >= 2 grid programs on the parallel node
    axis (v7x megacore + x-tile DMA double buffering), (c) Mt = node_tile*B
    large enough (~256 rows) to amortize MXU fill/drain on the serial
    recurrence, with as many grid steps as that allows.
    """
    row_target = 256
    t_divs = sorted((d for d in range(1, T + 1) if T % d == 0), reverse=True)
    n_divs = sorted((d for d in range(1, N + 1) if N % d == 0), reverse=True)
    # Full-N block is always a legal x tile; otherwise rows must be sublane-aligned.
    legal = [d for d in n_divs if d == N or (d * B) % sublane == 0]

    feasible = []
    for d in legal:
        for tc in t_divs:                     # largest time chunk that fits
            vb = _vmem_bytes(d, tc, T, B, F, H, Tout, isz, sublane)
            if vb <= budget:
                feasible.append((d, tc, vb))
                break
    if not feasible:
        d = min(legal)
        tc = min(t_divs)
        return d, tc, _vmem_bytes(d, tc, T, B, F, H, Tout, isz, sublane)

    multi = [c for c in feasible if N // c[0] >= 2]
    pool = multi if multi else feasible
    reach = [c for c in pool if c[0] * B >= row_target]
    if reach:                                 # smallest tile reaching the row
        return min(reach, key=lambda c: c[0])   # target -> more grid steps
    return max(pool, key=lambda c: c[0])        # else: biggest rows available


def global_rnn_forward(A, X, params, *, matmul_dtype=jnp.bfloat16):
    """Pallas implementation of GlobalRNN.forward. A is deprecated/unused."""
    del A
    B, N, T, F = X.shape
    H = params["w_hh"].shape[-1]
    Tout = params["w_lin"].shape[1]
    H4 = 4 * H

    # ---- glue: layout/dtype repacking only; all compute is in the kernel ----
    # time-major, node-major rows: x[t, n*B + b, f]
    x_k = (jnp.transpose(X, (2, 1, 0, 3))
           .reshape(T, N * B, F).astype(matmul_dtype))
    order = (0, 1, 3, 2)                      # params store (i, f, g, o)
    w_ih_k = jnp.concatenate([params["w_ih"][g] for g in order],
                             axis=1).astype(matmul_dtype)           # (F, 4H)
    w_hh_k = jnp.concatenate([params["w_hh"][g] for g in order],
                             axis=1).astype(matmul_dtype)           # (H, 4H)
    b_all = params["b_ih"] + params["b_hh"]
    b_k = jnp.concatenate([b_all[g] for g in order],
                          axis=0).reshape(1, H4).astype(jnp.float32)
    # Per-node heads, UNPADDED: (N, Tout, H) -> (N, H, Tout) in matmul dtype.
    w_out_k = jnp.transpose(params["w_lin"], (0, 2, 1)).astype(matmul_dtype)
    b_out_k = params["b_lin"].astype(jnp.float32).reshape(N, 1, Tout)

    isz = jnp.dtype(matmul_dtype).itemsize
    sublane = 8 if isz == 4 else 16

    vmem_cap = _vmem_capacity_bytes()
    node_tile, time_chunk, vmem_need = _pick_tiling(
        N, B, T, F, H, Tout, isz, sublane, budget=int(0.70 * vmem_cap))
    Mt = node_tile * B
    grid = (N // node_tile,)

    grid_spec = pltpu.PrefetchScalarGridSpec(
        num_scalar_prefetch=0,
        grid=grid,
        in_specs=[
            pl.BlockSpec((T, Mt, F), lambda i: (0, i, 0)),            # x tile
            pl.BlockSpec((F, H4), lambda i: (0, 0)),                  # W_ih
            pl.BlockSpec((H, H4), lambda i: (0, 0)),                  # W_hh
            pl.BlockSpec((1, H4), lambda i: (0, 0)),                  # bias
            pl.BlockSpec((node_tile, H, Tout), lambda i: (i, 0, 0)),  # head W
            pl.BlockSpec((node_tile, 1, Tout), lambda i: (i, 0, 0)),  # head b
        ],
        out_specs=pl.BlockSpec((node_tile, B, Tout), lambda i: (i, 0, 0)),
        scratch_shapes=[pltpu.VMEM((time_chunk, Mt, H4), jnp.float32)],
    )

    # Generation-aware scoped VMEM limit (~96 MiB on v5e/v6e, ~48 MiB on v7x).
    vmem_limit = int(min(max(int(1.25 * vmem_need), 16 * 1024 * 1024),
                         int(0.75 * vmem_cap)))

    M = N * B
    cost = pl.CostEstimate(
        flops=2 * T * M * (F + H) * H4 + 2 * M * H * Tout,
        transcendentals=5 * T * M * H,
        bytes_accessed=(T * M * F * isz + (F + H) * H4 * isz + H4 * 4
                        + N * H * Tout * isz + N * Tout * 4
                        + N * B * Tout * 4),
    )

    out_k = pl.pallas_call(
        functools.partial(_global_rnn_kernel, time_chunk=time_chunk),
        out_shape=jax.ShapeDtypeStruct((N, B, Tout), jnp.float32),
        grid_spec=grid_spec,
        compiler_params=pltpu.CompilerParams(
            dimension_semantics=("parallel",),
            vmem_limit_bytes=vmem_limit),
        cost_estimate=cost,
    )(x_k, w_ih_k, w_hh_k, b_k, w_out_k, b_out_k)

    # (N, B, Tout) -> (B, N, Tout), matching the PyTorch output layout.
    return jnp.transpose(out_k, (1, 0, 2))


def reference_forward(A, X, params):
    """Pure-JAX reference matching the PyTorch forward semantics (f32)."""
    del A
    B, N, T, F = X.shape
    w_ih, w_hh = params["w_ih"], params["w_hh"]
    b = params["b_ih"] + params["b_hh"]
    w_lin, b_lin = params["w_lin"], params["b_lin"]
    H = w_hh.shape[-1]

    xs = jnp.transpose(X, (2, 1, 0, 3)).reshape(T, N * B, F)

    def step(carry, x_t):
        h, c = carry
        gates = [x_t @ w_ih[g] + h @ w_hh[g] + b[g] for g in range(4)]
        i = jax.nn.sigmoid(gates[0])
        f = jax.nn.sigmoid(gates[1])
        g_ = jnp.tanh(gates[2])
        o = jax.nn.sigmoid(gates[3])
        c = f * c + i * g_
        h = o * jnp.tanh(c)
        return (h, c), h

    init = (jnp.zeros((N * B, H), jnp.float32),
            jnp.zeros((N * B, H), jnp.float32))
    _, hs = jax.lax.scan(step, init, xs)
    mean_h = hs.mean(axis=0).reshape(N, B, H)
    out = jnp.einsum("nbh,nth->nbt", mean_h, w_lin) + b_lin[:, None, :]
    return jnp.transpose(out, (1, 0, 2))


def init_params(key, num_nodes, num_features, hidden_size, num_timesteps_output):
    ks = jax.random.split(key, 6)
    bound = 1.0 / np.sqrt(hidden_size)
    return {
        # LSTM params, stored per-gate: (4, F, H), (4, H, H), (4, H)
        "w_ih": jax.random.uniform(ks[0], (4, num_features, hidden_size),
                                   jnp.float32, -bound, bound),
        "w_hh": jax.random.uniform(ks[1], (4, hidden_size, hidden_size),
                                   jnp.float32, -bound, bound),
        "b_ih": jax.random.uniform(ks[2], (4, hidden_size),
                                   jnp.float32, -bound, bound),
        "b_hh": jax.random.uniform(ks[3], (4, hidden_size),
                                   jnp.float32, -bound, bound),
        # Per-node Linear(hidden_size -> num_timesteps_output)
        "w_lin": jax.random.uniform(ks[4], (num_nodes, num_timesteps_output, hidden_size),
                                    jnp.float32, -bound, bound),
        "b_lin": jax.random.uniform(ks[5], (num_nodes, num_timesteps_output),
                                    jnp.float32, -bound, bound),
    }


if __name__ == "__main__":
    # batch, nodes, timesteps_in, features, hidden, timesteps_out
    B, N, T, F, H, Tout = 2, 4, 8, 4, 32, 3

    key = jax.random.PRNGKey(0)
    kx, kp = jax.random.split(key)
    X = jax.random.normal(kx, (B, N, T, F), dtype=jnp.float32)
    A = jnp.eye(N, dtype=jnp.float32)   # deprecated in the pure-TS model; unused

    params = init_params(kp, N, F, H, Tout)

    ref = jax.block_until_ready(reference_forward(A, X, params))

    # f32 MXU path: tight check against the pure-JAX/PyTorch-equivalent ref.
    out_f32 = jax.block_until_ready(
        global_rnn_forward(A, X, params, matmul_dtype=jnp.float32))
    assert out_f32.shape == (B, N, Tout), out_f32.shape
    np.testing.assert_allclose(np.asarray(out_f32), np.asarray(ref),
                               rtol=2e-3, atol=2e-3)

    # bf16 MXU path (recommended on v6e/v7x); loose sanity bound only, since
    # x/W_ih/W_hh and the head weights are all bf16 on this path.
    out_bf16 = jax.block_until_ready(
        global_rnn_forward(A, X, params, matmul_dtype=jnp.bfloat16))
    assert out_bf16.shape == (B, N, Tout), out_bf16.shape
    assert float(jnp.max(jnp.abs(out_bf16 - ref))) < 1e-1, "bf16 path diverged"

    print("KERNEL_OK")
</pallas_src>

<mosaic_0001>
module attributes {stable_mosaic.version = 11 : i64} {
  func.func @_global_rnn_kernel(%arg0: i32, %arg1: memref<8x8x4xf32, #tpu.memory_space<vmem>>, %arg2: memref<4x128xf32, #tpu.memory_space<vmem>>, %arg3: memref<32x128xf32, #tpu.memory_space<vmem>>, %arg4: memref<1x128xf32, #tpu.memory_space<vmem>>, %arg5: memref<4x32x3xf32, #tpu.memory_space<vmem>>, %arg6: memref<4x1x3xf32, #tpu.memory_space<vmem>>, %arg7: memref<4x2x3xf32, #tpu.memory_space<vmem>>, %arg8: memref<8x8x128xf32, #tpu.memory_space<vmem>>) attributes {dimension_semantics = [#tpu.dimension_semantics<parallel>], iteration_bounds = array<i64: 1>, scalar_prefetch = 0 : i64, scratch_operands = 1 : i64, tpu.core_type = #tpu.core_type<tc>, window_params = [{transform_indices = @transform_0, window_bounds = array<i64: 8, 8, 4>}, {pipeline_mode = #tpu.pipeline_mode<synchronous>, transform_indices = @transform_1, window_bounds = array<i64: 4, 128>}, {pipeline_mode = #tpu.pipeline_mode<synchronous>, transform_indices = @transform_2, window_bounds = array<i64: 32, 128>}, {pipeline_mode = #tpu.pipeline_mode<synchronous>, transform_indices = @transform_3, window_bounds = array<i64: 1, 128>}, {transform_indices = @transform_4, window_bounds = array<i64: 4, 32, 3>}, {transform_indices = @transform_5, window_bounds = array<i64: 4, 1, 3>}, {transform_indices = @transform_6, window_bounds = array<i64: 4, 2, 3>}]} {
    %c0 = arith.constant 0 : index
    %c0_0 = arith.constant 0 : index
    %0 = vector.load %arg2[%c0, %c0_0] : memref<4x128xf32, #tpu.memory_space<vmem>>, vector<4x128xf32>
    %c0_1 = arith.constant 0 : index
    %c0_2 = arith.constant 0 : index
    %1 = vector.load %arg3[%c0_1, %c0_2] : memref<32x128xf32, #tpu.memory_space<vmem>>, vector<32x128xf32>
    %c0_3 = arith.constant 0 : index
    %c0_4 = arith.constant 0 : index
    %2 = vector.load %arg4[%c0_3, %c0_4] : memref<1x128xf32, #tpu.memory_space<vmem>>, vector<1x128xf32>
    %cst = arith.constant 0.000000e+00 : f32
    %3 = vector.broadcast %cst : f32 to vector<8x32xf32>
    %c0_5 = arith.constant 0 : index
    %c0_6 = arith.constant 0 : index
    %c0_7 = arith.constant 0 : index
    %4 = vector.load %arg1[%c0_5, %c0_6, %c0_7] : memref<8x8x4xf32, #tpu.memory_space<vmem>>, vector<8x8x4xf32>
    %5 = vector.shape_cast %4 : vector<8x8x4xf32> to vector<64x4xf32>
    %cst_8 = arith.constant dense<0.000000e+00> : vector<64x128xf32>
    %6 = tpu.matmul %5, %0, %cst_8 {dimension_numbers = #tpu.dot_dimension_numbers<[1], [0], [0], [1], [0, 0, 1, 1], [], []>} : vector<64x4xf32>, vector<4x128xf32>, vector<64x128xf32> -> vector<64x128xf32>
    %7 = vector.broadcast %2 : vector<1x128xf32> to vector<64x128xf32>
    %8 = arith.addf %6, %7 : vector<64x128xf32>
    %9 = vector.shape_cast %8 : vector<64x128xf32> to vector<8x8x128xf32>
    %c0_9 = arith.constant 0 : index
    %c0_10 = arith.constant 0 : index
    %c0_11 = arith.constant 0 : index
    %10 = vector.load %arg8[%c0_9, %c0_10, %c0_11] : memref<8x8x128xf32, #tpu.memory_space<vmem>>, vector<8x8x128xf32>
    tpu.vector_store %arg8[%c0_9, %c0_10, %c0_11], %9 {strides = array<i32>} : memref<8x8x128xf32, #tpu.memory_space<vmem>>, vector<8x8x128xf32>,
    %c0_i32 = arith.constant 0 : i32
    %11 = arith.index_cast %c0_i32 : i32 to index
    %c0_12 = arith.constant 0 : index
    %c0_13 = arith.constant 0 : index
    %12 = vector.load %arg8[%11, %c0_12, %c0_13] : memref<8x8x128xf32, #tpu.memory_space<vmem>>, vector<1x8x128xf32>
    %13 = vector.shape_cast %12 : vector<1x8x128xf32> to vector<8x128xf32>
    %cst_14 = arith.constant dense<0.000000e+00> : vector<8x128xf32>
    %14 = tpu.matmul %3, %1, %cst_14 {dimension_numbers = #tpu.dot_dimension_numbers<[1], [0], [0], [1], [0, 0, 1, 1], [], []>} : vector<8x32xf32>, vector<32x128xf32>, vector<8x128xf32> -> vector<8x128xf32>
    %15 = arith.addf %13, %14 : vector<8x128xf32>
    %16 = vector.extract_strided_slice %15 {offsets = [0, 0], sizes = [8, 96], strides = [1, 1]} : vector<8x128xf32> to vector<8x96xf32>
    %17 = arith.negf %16 : vector<8x96xf32>
    %18 = math.exp %17 : vector<8x96xf32>
    %cst_15 = arith.constant 1.000000e+00 : f32
    %19 = vector.broadcast %cst_15 : f32 to vector<8x96xf32>
    %20 = arith.addf %19, %18 : vector<8x96xf32>
    %21 = arith.divf %19, %20 : vector<8x96xf32>
    %22 = vector.extract_strided_slice %15 {offsets = [0, 96], sizes = [8, 32], strides = [1, 1]} : vector<8x128xf32> to vector<8x32xf32>
    %23 = math.tanh %22 : vector<8x32xf32>
    %24 = vector.extract_strided_slice %21 {offsets = [0, 0], sizes = [8, 32], strides = [1, 1]} : vector<8x96xf32> to vector<8x32xf32>
    %25 = vector.extract_strided_slice %21 {offsets = [0, 32], sizes = [8, 32], strides = [1, 1]} : vector<8x96xf32> to vector<8x32xf32>
    %26 = vector.extract_strided_slice %21 {offsets = [0, 64], sizes = [8, 32], strides = [1, 1]} : vector<8x96xf32> to vector<8x32xf32>
    %27 = arith.mulf %25, %3 : vector<8x32xf32>
    %28 = arith.mulf %24, %23 : vector<8x32xf32>
    %29 = arith.addf %27, %28 : vector<8x32xf32>
    %30 = math.tanh %29 : vector<8x32xf32>
    %31 = arith.mulf %26, %30 : vector<8x32xf32>
    %32 = arith.addf %3, %31 : vector<8x32xf32>
    %c1_i32 = arith.constant 1 : i32
    %33 = arith.index_cast %c1_i32 : i32 to index
    %c0_16 = arith.constant 0 : index
    %c0_17 = arith.constant 0 : index
    %34 = vector.load %arg8[%33, %c0_16, %c0_17] : memref<8x8x128xf32, #tpu.memory_space<vmem>>, vector<1x8x128xf32>
    %35 = vector.shape_cast %34 : vector<1x8x128xf32> to vector<8x128xf32>
    %cst_18 = arith.constant dense<0.000000e+00> : vector<8x128xf32>
    %36 = tpu.matmul %31, %1, %cst_18 {dimension_numbers = #tpu.dot_dimension_numbers<[1], [0], [0], [1], [0, 0, 1, 1], [], []>} : vector<8x32xf32>, vector<32x128xf32>, vector<8x128xf32> -> vector<8x128xf32>
    %37 = arith.addf %35, %36 : vector<8x128xf32>
    %38 = vector.extract_strided_slice %37 {offsets = [0, 0], sizes = [8, 96], strides = [1, 1]} : vector<8x128xf32> to vector<8x96xf32>
    %39 = arith.negf %38 : vector<8x96xf32>
    %40 = math.exp %39 : vector<8x96xf32>
    %cst_19 = arith.constant 1.000000e+00 : f32
    %41 = vector.broadcast %cst_19 : f32 to vector<8x96xf32>
    %42 = arith.addf %41, %40 : vector<8x96xf32>
    %43 = arith.divf %41, %42 : vector<8x96xf32>
    %44 = vector.extract_strided_slice %37 {offsets = [0, 96], sizes = [8, 32], strides = [1, 1]} : vector<8x128xf32> to vector<8x32xf32>
    %45 = math.tanh %44 : vector<8x32xf32>
    %46 = vector.extract_strided_slice %43 {offsets = [0, 0], sizes = [8, 32], strides = [1, 1]} : vector<8x96xf32> to vector<8x32xf32>
    %47 = vector.extract_strided_slice %43 {offsets = [0, 32], sizes = [8, 32], strides = [1, 1]} : vector<8x96xf32> to vector<8x32xf32>
    %48 = vector.extract_strided_slice %43 {offsets = [0, 64], sizes = [8, 32], strides = [1, 1]} : vector<8x96xf32> to vector<8x32xf32>
    %49 = arith.mulf %47, %29 : vector<8x32xf32>
    %50 = arith.mulf %46, %45 : vector<8x32xf32>
    %51 = arith.addf %49, %50 : vector<8x32xf32>
    %52 = math.tanh %51 : vector<8x32xf32>
    %53 = arith.mulf %48, %52 : vector<8x32xf32>
    %54 = arith.addf %32, %53 : vector<8x32xf32>
    %c2_i32 = arith.constant 2 : i32
    %55 = arith.index_cast %c2_i32 : i32 to index
    %c0_20 = arith.constant 0 : index
    %c0_21 = arith.constant 0 : index
    %56 = vector.load %arg8[%55, %c0_20, %c0_21] : memref<8x8x128xf32, #tpu.memory_space<vmem>>, vector<1x8x128xf32>
    %57 = vector.shape_cast %56 : vector<1x8x128xf32> to vector<8x128xf32>
    %cst_22 = arith.constant dense<0.000000e+00> : vector<8x128xf32>
    %58 = tpu.matmul %53, %1, %cst_22 {dimension_numbers = #tpu.dot_dimension_numbers<[1], [0], [0], [1], [0, 0, 1, 1], [], []>} : vector<8x32xf32>, vector<32x128xf32>, vector<8x128xf32> -> vector<8x128xf32>
    %59 = arith.addf %57, %58 : vector<8x128xf32>
    %60 = vector.extract_strided_slice %59 {offsets = [0, 0], sizes = [8, 96], strides = [1, 1]} : vector<8x128xf32> to vector<8x96xf32>
    %61 = arith.negf %60 : vector<8x96xf32>
    %62 = math.exp %61 : vector<8x96xf32>
    %cst_23 = arith.constant 1.000000e+00 : f32
    %63 = vector.broadcast %cst_23 : f32 to vector<8x96xf32>
    %64 = arith.addf %63, %62 : vector<8x96xf32>
    %65 = arith.divf %63, %64 : vector<8x96xf32>
    %66 = vector.extract_strided_slice %59 {offsets = [0, 96], sizes = [8, 32], strides = [1, 1]} : vector<8x128xf32> to vector<8x32xf32>
    %67 = math.tanh %66 : vector<8x32xf32>
    %68 = vector.extract_strided_slice %65 {offsets = [0, 0], sizes = [8, 32], strides = [1, 1]} : vector<8x96xf32> to vector<8x32xf32>
    %69 = vector.extract_strided_slice %65 {offsets = [0, 32], sizes = [8, 32], strides = [1, 1]} : vector<8x96xf32> to vector<8x32xf32>
    %70 = vector.extract_strided_slice %65 {offsets = [0, 64], sizes = [8, 32], strides = [1, 1]} : vector<8x96xf32> to vector<8x32xf32>
    %71 = arith.mulf %69, %51 : vector<8x32xf32>
    %72 = arith.mulf %68, %67 : vector<8x32xf32>
    %73 = arith.addf %71, %72 : vector<8x32xf32>
    %74 = math.tanh %73 : vector<8x32xf32>
    %75 = arith.mulf %70, %74 : vector<8x32xf32>
    %76 = arith.addf %54, %75 : vector<8x32xf32>
    %c3_i32 = arith.constant 3 : i32
    %77 = arith.index_cast %c3_i32 : i32 to index
    %c0_24 = arith.constant 0 : index
    %c0_25 = arith.constant 0 : index
    %78 = vector.load %arg8[%77, %c0_24, %c0_25] : memref<8x8x128xf32, #tpu.memory_space<vmem>>, vector<1x8x128xf32>
    %79 = vector.shape_cast %78 : vector<1x8x128xf32> to vector<8x128xf32>
    %cst_26 = arith.constant dense<0.000000e+00> : vector<8x128xf32>
    %80 = tpu.matmul %75, %1, %cst_26 {dimension_numbers = #tpu.dot_dimension_numbers<[1], [0], [0], [1], [0, 0, 1, 1], [], []>} : vector<8x32xf32>, vector<32x128xf32>, vector<8x128xf32> -> vector<8x128xf32>
    %81 = arith.addf %79, %80 : vector<8x128xf32>
    %82 = vector.extract_strided_slice %81 {offsets = [0, 0], sizes = [8, 96], strides = [1, 1]} : vector<8x128xf32> to vector<8x96xf32>
    %83 = arith.negf %82 : vector<8x96xf32>
    %84 = math.exp %83 : vector<8x96xf32>
    %cst_27 = arith.constant 1.000000e+00 : f32
    %85 = vector.broadcast %cst_27 : f32 to vector<8x96xf32>
    %86 = arith.addf %85, %84 : vector<8x96xf32>
    %87 = arith.divf %85, %86 : vector<8x96xf32>
    %88 = vector.extract_strided_slice %81 {offsets = [0, 96], sizes = [8, 32], strides = [1, 1]} : vector<8x128xf32> to vector<8x32xf32>
    %89 = math.tanh %88 : vector<8x32xf32>
    %90 = vector.extract_strided_slice %87 {offsets = [0, 0], sizes = [8, 32], strides = [1, 1]} : vector<8x96xf32> to vector<8x32xf32>
    %91 = vector.extract_strided_slice %87 {offsets = [0, 32], sizes = [8, 32], strides = [1, 1]} : vector<8x96xf32> to vector<8x32xf32>
    %92 = vector.extract_strided_slice %87 {offsets = [0, 64], sizes = [8, 32], strides = [1, 1]} : vector<8x96xf32> to vector<8x32xf32>
    %93 = arith.mulf %91, %73 : vector<8x32xf32>
    %94 = arith.mulf %90, %89 : vector<8x32xf32>
    %95 = arith.addf %93, %94 : vector<8x32xf32>
    %96 = math.tanh %95 : vector<8x32xf32>
    %97 = arith.mulf %92, %96 : vector<8x32xf32>
    %98 = arith.addf %76, %97 : vector<8x32xf32>
    %c4_i32 = arith.constant 4 : i32
    %99 = arith.index_cast %c4_i32 : i32 to index
    %c0_28 = arith.constant 0 : index
    %c0_29 = arith.constant 0 : index
    %100 = vector.load %arg8[%99, %c0_28, %c0_29] : memref<8x8x128xf32, #tpu.memory_space<vmem>>, vector<1x8x128xf32>
    %101 = vector.shape_cast %100 : vector<1x8x128xf32> to vector<8x128xf32>
    %cst_30 = arith.constant dense<0.000000e+00> : vector<8x128xf32>
    %102 = tpu.matmul %97, %1, %cst_30 {dimension_numbers = #tpu.dot_dimension_numbers<[1], [0], [0], [1], [0, 0, 1, 1], [], []>} : vector<8x32xf32>, vector<32x128xf32>, vector<8x128xf32> -> vector<8x128xf32>
    %103 = arith.addf %101, %102 : vector<8x128xf32>
    %104 = vector.extract_strided_slice %103 {offsets = [0, 0], sizes = [8, 96], strides = [1, 1]} : vector<8x128xf32> to vector<8x96xf32>
    %105 = arith.negf %104 : vector<8x96xf32>
    %106 = math.exp %105 : vector<8x96xf32>
    %cst_31 = arith.constant 1.000000e+00 : f32
    %107 = vector.broadcast %cst_31 : f32 to vector<8x96xf32>
    %108 = arith.addf %107, %106 : vector<8x96xf32>
    %109 = arith.divf %107, %108 : vector<8x96xf32>
    %110 = vector.extract_strided_slice %103 {offsets = [0, 96], sizes = [8, 32], strides = [1, 1]} : vector<8x128xf32> to vector<8x32xf32>
    %111 = math.tanh %110 : vector<8x32xf32>
    %112 = vector.extract_strided_slice %109 {offsets = [0, 0], sizes = [8, 32], strides = [1, 1]} : vector<8x96xf32> to vector<8x32xf32>
    %113 = vector.extract_strided_slice %109 {offsets = [0, 32], sizes = [8, 32], strides = [1, 1]} : vector<8x96xf32> to vector<8x32xf32>
    %114 = vector.extract_strided_slice %109 {offsets = [0, 64], sizes = [8, 32], strides = [1, 1]} : vector<8x96xf32> to vector<8x32xf32>
    %115 = arith.mulf %113, %95 : vector<8x32xf32>
    %116 = arith.mulf %112, %111 : vector<8x32xf32>
    %117 = arith.addf %115, %116 : vector<8x32xf32>
    %118 = math.tanh %117 : vector<8x32xf32>
    %119 = arith.mulf %114, %118 : vector<8x32xf32>
    %120 = arith.addf %98, %119 : vector<8x32xf32>
    %c5_i32 = arith.constant 5 : i32
    %121 = arith.index_cast %c5_i32 : i32 to index
    %c0_32 = arith.constant 0 : index
    %c0_33 = arith.constant 0 : index
    %122 = vector.load %arg8[%121, %c0_32, %c0_33] : memref<8x8x128xf32, #tpu.memory_space<vmem>>, vector<1x8x128xf32>
    %123 = vector.shape_cast %122 : vector<1x8x128xf32> to vector<8x128xf32>
    %cst_34 = arith.constant dense<0.000000e+00> : vector<8x128xf32>
    %124 = tpu.matmul %119, %1, %cst_34 {dimension_numbers = #tpu.dot_dimension_numbers<[1], [0], [0], [1], [0, 0, 1, 1], [], []>} : vector<8x32xf32>, vector<32x128xf32>, vector<8x128xf32> -> vector<8x128xf32>
    %125 = arith.addf %123, %124 : vector<8x128xf32>
    %126 = vector.extract_strided_slice %125 {offsets = [0, 0], sizes = [8, 96], strides = [1, 1]} : vector<8x128xf32> to vector<8x96xf32>
    %127 = arith.negf %126 : vector<8x96xf32>
    %128 = math.exp %127 : vector<8x96xf32>
    %cst_35 = arith.constant 1.000000e+00 : f32
    %129 = vector.broadcast %cst_35 : f32 to vector<8x96xf32>
    %130 = arith.addf %129, %128 : vector<8x96xf32>
    %131 = arith.divf %129, %130 : vector<8x96xf32>
    %132 = vector.extract_strided_slice %125 {offsets = [0, 96], sizes = [8, 32], strides = [1, 1]} : vector<8x128xf32> to vector<8x32xf32>
    %133 = math.tanh %132 : vector<8x32xf32>
    %134 = vector.extract_strided_slice %131 {offsets = [0, 0], sizes = [8, 32], strides = [1, 1]} : vector<8x96xf32> to vector<8x32xf32>
    %135 = vector.extract_strided_slice %131 {offsets = [0, 32], sizes = [8, 32], strides = [1, 1]} : vector<8x96xf32> to vector<8x32xf32>
    %136 = vector.extract_strided_slice %131 {offsets = [0, 64], sizes = [8, 32], strides = [1, 1]} : vector<8x96xf32> to vector<8x32xf32>
    %137 = arith.mulf %135, %117 : vector<8x32xf32>
    %138 = arith.mulf %134, %133 : vector<8x32xf32>
    %139 = arith.addf %137, %138 : vector<8x32xf32>
    %140 = math.tanh %139 : vector<8x32xf32>
    %141 = arith.mulf %136, %140 : vector<8x32xf32>
    %142 = arith.addf %120, %141 : vector<8x32xf32>
    %c6_i32 = arith.constant 6 : i32
    %143 = arith.index_cast %c6_i32 : i32 to index
    %c0_36 = arith.constant 0 : index
    %c0_37 = arith.constant 0 : index
    %144 = vector.load %arg8[%143, %c0_36, %c0_37] : memref<8x8x128xf32, #tpu.memory_space<vmem>>, vector<1x8x128xf32>
    %145 = vector.shape_cast %144 : vector<1x8x128xf32> to vector<8x128xf32>
    %cst_38 = arith.constant dense<0.000000e+00> : vector<8x128xf32>
    %146 = tpu.matmul %141, %1, %cst_38 {dimension_numbers = #tpu.dot_dimension_numbers<[1], [0], [0], [1], [0, 0, 1, 1], [], []>} : vector<8x32xf32>, vector<32x128xf32>, vector<8x128xf32> -> vector<8x128xf32>
    %147 = arith.addf %145, %146 : vector<8x128xf32>
    %148 = vector.extract_strided_slice %147 {offsets = [0, 0], sizes = [8, 96], strides = [1, 1]} : vector<8x128xf32> to vector<8x96xf32>
    %149 = arith.negf %148 : vector<8x96xf32>
    %150 = math.exp %149 : vector<8x96xf32>
    %cst_39 = arith.constant 1.000000e+00 : f32
    %151 = vector.broadcast %cst_39 : f32 to vector<8x96xf32>
    %152 = arith.addf %151, %150 : vector<8x96xf32>
    %153 = arith.divf %151, %152 : vector<8x96xf32>
    %154 = vector.extract_strided_slice %147 {offsets = [0, 96], sizes = [8, 32], strides = [1, 1]} : vector<8x128xf32> to vector<8x32xf32>
    %155 = math.tanh %154 : vector<8x32xf32>
    %156 = vector.extract_strided_slice %153 {offsets = [0, 0], sizes = [8, 32], strides = [1, 1]} : vector<8x96xf32> to vector<8x32xf32>
    %157 = vector.extract_strided_slice %153 {offsets = [0, 32], sizes = [8, 32], strides = [1, 1]} : vector<8x96xf32> to vector<8x32xf32>
    %158 = vector.extract_strided_slice %153 {offsets = [0, 64], sizes = [8, 32], strides = [1, 1]} : vector<8x96xf32> to vector<8x32xf32>
    %159 = arith.mulf %157, %139 : vector<8x32xf32>
    %160 = arith.mulf %156, %155 : vector<8x32xf32>
    %161 = arith.addf %159, %160 : vector<8x32xf32>
    %162 = math.tanh %161 : vector<8x32xf32>
    %163 = arith.mulf %158, %162 : vector<8x32xf32>
    %164 = arith.addf %142, %163 : vector<8x32xf32>
    %c7_i32 = arith.constant 7 : i32
    %165 = arith.index_cast %c7_i32 : i32 to index
    %c0_40 = arith.constant 0 : index
    %c0_41 = arith.constant 0 : index
    %166 = vector.load %arg8[%165, %c0_40, %c0_41] : memref<8x8x128xf32, #tpu.memory_space<vmem>>, vector<1x8x128xf32>
    %167 = vector.shape_cast %166 : vector<1x8x128xf32> to vector<8x128xf32>
    %cst_42 = arith.constant dense<0.000000e+00> : vector<8x128xf32>
    %168 = tpu.matmul %163, %1, %cst_42 {dimension_numbers = #tpu.dot_dimension_numbers<[1], [0], [0], [1], [0, 0, 1, 1], [], []>} : vector<8x32xf32>, vector<32x128xf32>, vector<8x128xf32> -> vector<8x128xf32>
    %169 = arith.addf %167, %168 : vector<8x128xf32>
    %170 = vector.extract_strided_slice %169 {offsets = [0, 0], sizes = [8, 96], strides = [1, 1]} : vector<8x128xf32> to vector<8x96xf32>
    %171 = arith.negf %170 : vector<8x96xf32>
    %172 = math.exp %171 : vector<8x96xf32>
    %cst_43 = arith.constant 1.000000e+00 : f32
    %173 = vector.broadcast %cst_43 : f32 to vector<8x96xf32>
    %174 = arith.addf %173, %172 : vector<8x96xf32>
    %175 = arith.divf %173, %174 : vector<8x96xf32>
    %176 = vector.extract_strided_slice %169 {offsets = [0, 96], sizes = [8, 32], strides = [1, 1]} : vector<8x128xf32> to vector<8x32xf32>
    %177 = math.tanh %176 : vector<8x32xf32>
    %178 = vector.extract_strided_slice %175 {offsets = [0, 0], sizes = [8, 32], strides = [1, 1]} : vector<8x96xf32> to vector<8x32xf32>
    %179 = vector.extract_strided_slice %175 {offsets = [0, 32], sizes = [8, 32], strides = [1, 1]} : vector<8x96xf32> to vector<8x32xf32>
    %180 = vector.extract_strided_slice %175 {offsets = [0, 64], sizes = [8, 32], strides = [1, 1]} : vector<8x96xf32> to vector<8x32xf32>
    %181 = arith.mulf %179, %161 : vector<8x32xf32>
    %182 = arith.mulf %178, %177 : vector<8x32xf32>
    %183 = arith.addf %181, %182 : vector<8x32xf32>
    %184 = math.tanh %183 : vector<8x32xf32>
    %185 = arith.mulf %180, %184 : vector<8x32xf32>
    %186 = arith.addf %164, %185 : vector<8x32xf32>
    %c8_i32 = arith.constant 8 : i32
    %cst_44 = arith.constant 1.250000e-01 : f32
    %187 = vector.broadcast %cst_44 : f32 to vector<8x32xf32>
    %188 = arith.mulf %186, %187 : vector<8x32xf32>
    %189 = vector.extract_strided_slice %188 {offsets = [0, 0], sizes = [2, 32], strides = [1, 1]} : vector<8x32xf32> to vector<2x32xf32>
    %c0_45 = arith.constant 0 : index
    %c0_46 = arith.constant 0 : index
    %c0_47 = arith.constant 0 : index
    %190 = vector.load %arg5[%c0_45, %c0_46, %c0_47] : memref<4x32x3xf32, #tpu.memory_space<vmem>>, vector<1x32x3xf32>
    %191 = vector.shape_cast %190 : vector<1x32x3xf32> to vector<32x3xf32>
    %cst_48 = arith.constant dense<0.000000e+00> : vector<2x3xf32>
    %192 = tpu.matmul %189, %191, %cst_48 {dimension_numbers = #tpu.dot_dimension_numbers<[1], [0], [0], [1], [0, 0, 1, 1], [], []>} : vector<2x32xf32>, vector<32x3xf32>, vector<2x3xf32> -> vector<2x3xf32>
    %c0_49 = arith.constant 0 : index
    %c0_50 = arith.constant 0 : index
    %c0_51 = arith.constant 0 : index
    %193 = vector.load %arg6[%c0_49, %c0_50, %c0_51] : memref<4x1x3xf32, #tpu.memory_space<vmem>>, vector<1x1x3xf32>
    %194 = vector.shape_cast %193 : vector<1x1x3xf32> to vector<1x3xf32>
    %195 = vector.broadcast %194 : vector<1x3xf32> to vector<2x3xf32>
    %196 = arith.addf %192, %195 : vector<2x3xf32>
    %c0_52 = arith.constant 0 : index
    %c0_53 = arith.constant 0 : index
    %c0_54 = arith.constant 0 : index
    %197 = vector.load %arg7[%c0_52, %c0_53, %c0_54] : memref<4x2x3xf32, #tpu.memory_space<vmem>>, vector<1x2x3xf32>
    %198 = vector.shape_cast %197 : vector<1x2x3xf32> to vector<2x3xf32>
    %199 = vector.shape_cast %196 : vector<2x3xf32> to vector<1x2x3xf32>
    tpu.vector_store %arg7[%c0_52, %c0_53, %c0_54], %199 {strides = array<i32>} : memref<4x2x3xf32, #tpu.memory_space<vmem>>, vector<1x2x3xf32>,
    %200 = vector.extract_strided_slice %188 {offsets = [2, 0], sizes = [2, 32], strides = [1, 1]} : vector<8x32xf32> to vector<2x32xf32>
    %c1 = arith.constant 1 : index
    %c0_55 = arith.constant 0 : index
    %c0_56 = arith.constant 0 : index
    %201 = vector.load %arg5[%c1, %c0_55, %c0_56] : memref<4x32x3xf32, #tpu.memory_space<vmem>>, vector<1x32x3xf32>
    %202 = vector.shape_cast %201 : vector<1x32x3xf32> to vector<32x3xf32>
    %cst_57 = arith.constant dense<0.000000e+00> : vector<2x3xf32>
    %203 = tpu.matmul %200, %202, %cst_57 {dimension_numbers = #tpu.dot_dimension_numbers<[1], [0], [0], [1], [0, 0, 1, 1], [], []>} : vector<2x32xf32>, vector<32x3xf32>, vector<2x3xf32> -> vector<2x3xf32>
    %c1_58 = arith.constant 1 : index
    %c0_59 = arith.constant 0 : index
    %c0_60 = arith.constant 0 : index
    %204 = vector.load %arg6[%c1_58, %c0_59, %c0_60] : memref<4x1x3xf32, #tpu.memory_space<vmem>>, vector<1x1x3xf32>
    %205 = vector.shape_cast %204 : vector<1x1x3xf32> to vector<1x3xf32>
    %206 = vector.broadcast %205 : vector<1x3xf32> to vector<2x3xf32>
    %207 = arith.addf %203, %206 : vector<2x3xf32>
    %c1_61 = arith.constant 1 : index
    %c0_62 = arith.constant 0 : index
    %c0_63 = arith.constant 0 : index
    %208 = vector.load %arg7[%c1_61, %c0_62, %c0_63] : memref<4x2x3xf32, #tpu.memory_space<vmem>>, vector<1x2x3xf32>
    %209 = vector.shape_cast %208 : vector<1x2x3xf32> to vector<2x3xf32>
    %210 = vector.shape_cast %207 : vector<2x3xf32> to vector<1x2x3xf32>
    tpu.vector_store %arg7[%c1_61, %c0_62, %c0_63], %210 {strides = array<i32>} : memref<4x2x3xf32, #tpu.memory_space<vmem>>, vector<1x2x3xf32>,
    %211 = vector.extract_strided_slice %188 {offsets = [4, 0], sizes = [2, 32], strides = [1, 1]} : vector<8x32xf32> to vector<2x32xf32>
    %c2 = arith.constant 2 : index
    %c0_64 = arith.constant 0 : index
    %c0_65 = arith.constant 0 : index
    %212 = vector.load %arg5[%c2, %c0_64, %c0_65] : memref<4x32x3xf32, #tpu.memory_space<vmem>>, vector<1x32x3xf32>
    %213 = vector.shape_cast %212 : vector<1x32x3xf32> to vector<32x3xf32>
    %cst_66 = arith.constant dense<0.000000e+00> : vector<2x3xf32>
    %214 = tpu.matmul %211, %213, %cst_66 {dimension_numbers = #tpu.dot_dimension_numbers<[1], [0], [0], [1], [0, 0, 1, 1], [], []>} : vector<2x32xf32>, vector<32x3xf32>, vector<2x3xf32> -> vector<2x3xf32>
    %c2_67 = arith.constant 2 : index
    %c0_68 = arith.constant 0 : index
    %c0_69 = arith.constant 0 : index
    %215 = vector.load %arg6[%c2_67, %c0_68, %c0_69] : memref<4x1x3xf32, #tpu.memory_space<vmem>>, vector<1x1x3xf32>
    %216 = vector.shape_cast %215 : vector<1x1x3xf32> to vector<1x3xf32>
    %217 = vector.broadcast %216 : vector<1x3xf32> to vector<2x3xf32>
    %218 = arith.addf %214, %217 : vector<2x3xf32>
    %c2_70 = arith.constant 2 : index
    %c0_71 = arith.constant 0 : index
    %c0_72 = arith.constant 0 : index
    %219 = vector.load %arg7[%c2_70, %c0_71, %c0_72] : memref<4x2x3xf32, #tpu.memory_space<vmem>>, vector<1x2x3xf32>
    %220 = vector.shape_cast %219 : vector<1x2x3xf32> to vector<2x3xf32>
    %221 = vector.shape_cast %218 : vector<2x3xf32> to vector<1x2x3xf32>
    tpu.vector_store %arg7[%c2_70, %c0_71, %c0_72], %221 {strides = array<i32>} : memref<4x2x3xf32, #tpu.memory_space<vmem>>, vector<1x2x3xf32>,
    %222 = vector.extract_strided_slice %188 {offsets = [6, 0], sizes = [2, 32], strides = [1, 1]} : vector<8x32xf32> to vector<2x32xf32>
    %c3 = arith.constant 3 : index
    %c0_73 = arith.constant 0 : index
    %c0_74 = arith.constant 0 : index
    %223 = vector.load %arg5[%c3, %c0_73, %c0_74] : memref<4x32x3xf32, #tpu.memory_space<vmem>>, vector<1x32x3xf32>
    %224 = vector.shape_cast %223 : vector<1x32x3xf32> to vector<32x3xf32>
    %cst_75 = arith.constant dense<0.000000e+00> : vector<2x3xf32>
    %225 = tpu.matmul %222, %224, %cst_75 {dimension_numbers = #tpu.dot_dimension_numbers<[1], [0], [0], [1], [0, 0, 1, 1], [], []>} : vector<2x32xf32>, vector<32x3xf32>, vector<2x3xf32> -> vector<2x3xf32>
    %c3_76 = arith.constant 3 : index
    %c0_77 = arith.constant 0 : index
    %c0_78 = arith.constant 0 : index
    %226 = vector.load %arg6[%c3_76, %c0_77, %c0_78] : memref<4x1x3xf32, #tpu.memory_space<vmem>>, vector<1x1x3xf32>
    %227 = vector.shape_cast %226 : vector<1x1x3xf32> to vector<1x3xf32>
    %228 = vector.broadcast %227 : vector<1x3xf32> to vector<2x3xf32>
    %229 = arith.addf %225, %228 : vector<2x3xf32>
    %c3_79 = arith.constant 3 : index
    %c0_80 = arith.constant 0 : index
    %c0_81 = arith.constant 0 : index
    %230 = vector.load %arg7[%c3_79, %c0_80, %c0_81] : memref<4x2x3xf32, #tpu.memory_space<vmem>>, vector<1x2x3xf32>
    %231 = vector.shape_cast %230 : vector<1x2x3xf32> to vector<2x3xf32>
    %232 = vector.shape_cast %229 : vector<2x3xf32> to vector<1x2x3xf32>
    tpu.vector_store %arg7[%c3_79, %c0_80, %c0_81], %232 {strides = array<i32>} : memref<4x2x3xf32, #tpu.memory_space<vmem>>, vector<1x2x3xf32>,
    return
  }
  func.func @transform_0(%arg0: i32) -> (i32, i32, i32) {
    %c0_i32 = arith.constant 0 : i32
    %c0_i32_0 = arith.constant 0 : i32
    %c0_i32_1 = arith.constant 0 : i32
    return %c0_i32, %arg0, %c0_i32_0 : i32, i32, i32
  }
  func.func @transform_1(%arg0: i32) -> (i32, i32) {
    %c0_i32 = arith.constant 0 : i32
    %c0_i32_0 = arith.constant 0 : i32
    %c0_i32_1 = arith.constant 0 : i32
    return %c0_i32, %c0_i32_0 : i32, i32
  }
  func.func @transform_2(%arg0: i32) -> (i32, i32) {
    %c0_i32 = arith.constant 0 : i32
    %c0_i32_0 = arith.constant 0 : i32
    %c0_i32_1 = arith.constant 0 : i32
    return %c0_i32, %c0_i32_0 : i32, i32
  }
  func.func @transform_3(%arg0: i32) -> (i32, i32) {
    %c0_i32 = arith.constant 0 : i32
    %c0_i32_0 = arith.constant 0 : i32
    %c0_i32_1 = arith.constant 0 : i32
    return %c0_i32, %c0_i32_0 : i32, i32
  }
  func.func @transform_4(%arg0: i32) -> (i32, i32, i32) {
    %c0_i32 = arith.constant 0 : i32
    %c0_i32_0 = arith.constant 0 : i32
    %c0_i32_1 = arith.constant 0 : i32
    return %arg0, %c0_i32, %c0_i32_0 : i32, i32, i32
  }
  func.func @transform_5(%arg0: i32) -> (i32, i32, i32) {
    %c0_i32 = arith.constant 0 : i32
    %c0_i32_0 = arith.constant 0 : i32
    %c0_i32_1 = arith.constant 0 : i32
    return %arg0, %c0_i32, %c0_i32_0 : i32, i32, i32
  }
  func.func @transform_6(%arg0: i32) -> (i32, i32, i32) {
    %c0_i32 = arith.constant 0 : i32
    %c0_i32_0 = arith.constant 0 : i32
    %c0_i32_1 = arith.constant 0 : i32
    return %arg0, %c0_i32, %c0_i32_0 : i32, i32, i32
  }
}

</mosaic_0001>

<bundles_post_ra>
// kernel: tpu_custom_call.1
= control target key start
LH: loop header
LB: loop body
LE: loop exit
PB: predicated region body
PF: predicated region fallthrough
CT: control target
= control target key end

     0   :  { %vm68_vm0 = vcmask 1043456   ;;  %vm43_vm1 = vcmask 31744   ;;  %v1777_v0 = vmov 0.0|0.0   ;;  %vm1778_vm2 = vmmov 0   ;;  %s1780_s11 = smov 32   ;;  %s2086_s2 = inlined_call_operand.vmem [shape: f32[32,128], index: 2, kind: input, shape index: {}]   ;;  %s2087_s1 = inlined_call_operand.vmem [shape: f32[4,128], index: 1, kind: input, shape index: {}]   ;;  %s2088_s0 = inlined_call_operand.vmem [shape: f32[8,8,4], index: 0, kind: input, shape index: {}]   ;;  %s2089_s3 = inlined_call_operand.vmem [shape: f32[1,128], index: 3, kind: input, shape index: {}]   ;;  %s2090_s4 = inlined_call_operand.vmem [shape: f32[4,32,3], index: 4, kind: input, shape index: {}]   ;;  %s2091_s5 = inlined_call_operand.vmem [shape: f32[4,1,3], index: 5, kind: input, shape index: {}]   ;;  %s2092_s6 = inlined_call_operand.vmem [shape: f32[4,2,3], index: 6, kind: output, shape index: {}]  }
   0x1   :  { %1636 = vmatprep.subr.bf16.mxu1 %v1777_v0  ;;  %v24_v1 = vld [vmem:[%s2086_s2] sm:$0xff]  ;;  %v25_v2 = vld [vmem:[%s2086_s2 + $0x8] sm:$0xff]  ;;  %v26_v7 = vld [vmem:[%s2086_s2 + $0x10] sm:$0xff]  ;;  %v1779_v8 = vmov 0.0   ;;  %vm186_vm3 = vcmask 261120   ;;  %vm1094_vm4 = vcmask 17408  }
   0x2   :  { %v23_v3 = vld [vmem:[%s2087_s1] sm:$0xf]  ;;  %v1827_v4 = vpack.c.bf16 %v25_v2, %v24_v1  ;;  %v30_v6 = vld [vmem:[%s2088_s0 + $0x8] sm:$0xff]  ;;  %1512 = vmatprep.mubr.msk.f32.mxu1 %vm1778_vm2, %v1779_v8  ;;  %v27_v9 = vld [vmem:[%s2086_s2 + $0x18] sm:$0xff] }
   0x3   :  { %1490 = vmatprep.subr.msk.mxu0 %vm68_vm0, %v23_v3  ;;  %v29_v5 = vld [vmem:[%s2088_s0] sm:$0xff]  ;;  %v1848_v10 = vpack.c.bf16 %v27_v9, %v26_v7  ;;  %v31_v46 = vld [vmem:[%s2088_s0 + $0x10] sm:$0xff]  ;;  %v32_v47 = vld [vmem:[%s2088_s0 + $0x18] sm:$0xff] }
   0x4   :  { %1491 = vmatpush3.msk.msra.mxu0 %vm68_vm0, %v23_v3  ;;  %1492 = vmatprep.mubr.msk.f32.mxu0 %vm43_vm1, %v29_v5  ;;  %v1868_v12 = vld [vmem:[%s2089_s3] ss:$0 sm:$0xff]  ;;  %s1781_s3 = smov 64   ;;  %v34_v49 = vld [vmem:[%s2088_s0 + $0x28] sm:$0xff]  ;;  %v35_v50 = vld [vmem:[%s2088_s0 + $0x30] sm:$0xff] }
   0x5   :  { %1638 = vmatpush3.bf16.msra.mxu1 %v1827_v4  ;;  %1493 = vmatmul.mubr.msk.f32.vlgmr.msra.gmra.mrb[0].mxu0 %vm43_vm1, %v30_v6  ;;  %v33_v48 = vld [vmem:[%s2088_s0 + $0x20] sm:$0xff]  ;;  %v36_v51 = vld [vmem:[%s2088_s0 + $0x38] sm:$0xff] }
   0x6   :  { %1639 = vmatprep.subr.bf16.mxu1 %v1777_v0  ;;  %1648 = vmatprep.subr.bf16.mxu0 %v1777_v0 }
   0x7   :  { %1650 = vmatpush3.bf16.msra.mxu0 %v1827_v4  ;;  %1495 = vmatprep.mubr.msk.f32.mxu0 %vm43_vm1, %v31_v46 }
   0x8   :  { %1651 = vmatprep.subr.bf16.mxu0 %v1777_v0 }
   0x9   :  { %1641 = vmatpush3.bf16.msra.mxu1 %v1848_v10  ;;  %1496 = vmatmul.mubr.msk.f32.gmra.mrb[2].mxu0 %vm43_vm1, %v32_v47 }
   0xa   :  { %1642 = vmatprep.subr.bf16.mxu1 %v1777_v0  ;;  %1498 = vmatprep.mubr.msk.f32.mxu0 %vm43_vm1, %v33_v48 }
   0xb   :  { %1653 = vmatpush3.bf16.msra.mxu0 %v1848_v10 }
   0xc   :  { %1513 = vmatmul.mubr.f32.vlgmr.msra.gmra.mrb[0].mxu1 %v1779_v8  ;;  %1660 = vmatprep.subr.bf16.mxu0 %v1777_v0 }
   0xd   :  { %1644 = vmatpush3.bf16.msra.mxu1 %v1827_v4  ;;  %1523 = vmatprep.mubr.msk.f32.mxu1 %vm1778_vm2, %v1779_v8 }
   0xe   :  { %1645 = vmatprep.subr.bf16.mxu1 %v1777_v0  ;;  %1499 = vmatmul.mubr.msk.f32.gmra.mrb[4].mxu0 %vm43_vm1, %v34_v49 }
   0xf   :  { %1501 = vmatprep.mubr.msk.f32.mxu0 %vm43_vm1, %v35_v50 }
  0x11   :  { %1647 = vmatpush3.bf16.msra.mxu1 %v1848_v10 }
  0x12   :  { %1654 = vmatprep.subr.bf16.mxu1 %v1777_v0  ;;  %1502 = vmatmul.mubr.msk.f32.gmra.mrb[6].mxu0 %vm43_vm1, %v36_v51 }
  0x13   :  { %1534 = vmatprep.mubr.msk.f32.mxu0 %vm1778_vm2, %v1779_v8 }
  0xd8   :  { %v1494_v11 = vpop.f32.mrb[0].mxu0 }
  0xd9   :  { %v138_v13 = vpop.f32.mrb[1].mxu0  ;;  %v144_v32 = vadd.f32 %v1494_v11, %v1868_v12 }
  0xda   :  { %v139_v14 = vadd.f32 %v1868_v12, %v138_v13 }
  0xdc   :  { %v1497_v55 = vpop.f32.mrb[2].mxu0 }
  0xdd   :  { %v148_v56 = vpop.f32.mrb[3].mxu0 }
  0xde   :  { %v149_v62 = vadd.f32 %v1868_v12, %v148_v56 }
  0xdf   :  { %v256_v15 = vpop.f32.mrb[0].mxu1 }
  0xe0   :  { %v260_v16 = vadd.f32 %v256_v15, %v139_v14  ;;  %v1514_v17 = vpop.f32.mrb[1].mxu1 }
  0xe1   :  { %v1916_v57 = vpop.f32.mrb[4].mxu0 }
  0xe2   :  { %1713 = vtanh.f32 %v260_v16  ;;  %v1380_v19 = vmul.f32 -1.442695, %v260_v16  ;;  %v1918_v58 = vpop.f32.mrb[5].mxu0 }
  0xe4   :  { %1715 = vpow2.f32 %v1380_v19 }
  0xe5   :  { %v1920_v59 = vpop.f32.mrb[6].mxu0 }
  0xe6   :  { %v1922_v60 = vpop.f32.mrb[7].mxu0 }
  0xec   :  { %v1714_v18 = vpop.eup %1713 }
  0xed   :  { %270 = vrot.lane.b32.xlu0 %v1714_v18, %s1780_s11 }
  0xee   :  { %v1716_v20 = vpop.eup %1715 }
  0xef   :  { %v264_v21 = vadd.f32 1.0, %v1716_v20 }
  0xf1   :  { %1717 = vrcp.f32 %v264_v21 }
  0xfb   :  { %v1718_v22 = vpop.eup %1717 }
  0xfc   :  { %v268_v25 = vmul.f32 0.0, %v1718_v22 }
 0x15f   :  { %v271_v23 = vpop.permute.xlu0 %270 }
 0x160   :  { %v273_v24 = vmul.f32 %v1718_v22, %v271_v23  ;;  %v154_v23 = vadd.f32 %v1497_v55, %v1868_v12 }
 0x162   :  { %275 = vrot.lane.b32.xlu0 %v273_v24, %s1780_s11 }
 0x1d4   :  { %v276_v26 = vpop.permute.xlu0 %275 }
 0x1d5   :  { %v278_v27 = vadd.f32 %v276_v26, %v268_v25 }
 0x1d7   :  { %1719 = vtanh.f32 %v278_v27 }
 0x1e1   :  { %v1720_v28 = vpop.eup %1719 }
 0x1e2   :  { %281 = vrot.lane.b32.xlu1 %v1720_v28, %s1780_s11 }
 0x254   :  { %v282_v29 = vpop.permute.xlu1 %281 }
 0x255   :  { %v1874_v30 = vmul.f32 %v1718_v22, %v282_v29 }
 0x257   :  { %289 = vrot.lane.b32.xlu1 %v1874_v30, %s1781_s3 }
 0x2c9   :  { %v290_v31 = vpop.permute.xlu1 %289 }
 0x2ca   :  { %1524 = vmatmul.mubr.msk.f32.vlgmr.msra.gmra.mrb[2].mxu1 %vm186_vm3, %v290_v31 }
 0x2cb   :  { %1656 = vmatpush3.bf16.msra.mxu1 %v1827_v4  ;;  %1545 = vmatprep.mubr.msk.f32.mxu1 %vm1778_vm2, %v1779_v8 }
 0x2cc   :  { %1657 = vmatprep.subr.bf16.mxu1 %v1777_v0 }
 0x2cf   :  { %1659 = vmatpush3.bf16.msra.mxu1 %v1848_v10 }
 0x2d0   :  { %1666 = vmatprep.subr.bf16.mxu1 %v1777_v0 }
 0x39d   :  { %v359_v33 = vpop.f32.mrb[2].mxu1 }
 0x39e   :  { %v363_v34 = vadd.f32 %v359_v33, %v144_v32  ;;  %v1525_v35 = vpop.f32.mrb[3].mxu1 }
 0x3a0   :  { %1721 = vtanh.f32 %v363_v34  ;;  %v1382_v37 = vmul.f32 -1.442695, %v363_v34 }
 0x3a2   :  { %1723 = vpow2.f32 %v1382_v37 }
 0x3aa   :  { %v1722_v36 = vpop.eup %1721 }
 0x3ab   :  { %373 = vrot.lane.b32.xlu0 %v1722_v36, %s1780_s11 }
 0x3ac   :  { %v1724_v38 = vpop.eup %1723 }
 0x3ad   :  { %v367_v39 = vadd.f32 1.0, %v1724_v38 }
 0x3af   :  { %1725 = vrcp.f32 %v367_v39 }
 0x3b9   :  { %v1726_v40 = vpop.eup %1725 }
 0x3ba   :  { %v371_v43 = vmul.f32 %v1726_v40, %v278_v27 }
 0x41d   :  { %v374_v41 = vpop.permute.xlu0 %373 }
 0x41e   :  { %v376_v42 = vmul.f32 %v1726_v40, %v374_v41 }
 0x420   :  { %378 = vrot.lane.b32.xlu1 %v376_v42, %s1780_s11  ;;  %v159_v42 = vadd.f32 %v1868_v12, %v1918_v58 }
 0x492   :  { %v379_v44 = vpop.permute.xlu1 %378 }
 0x493   :  { %v381_v45 = vadd.f32 %v379_v44, %v371_v43 }
 0x495   :  { %1727 = vtanh.f32 %v381_v45 }
 0x49f   :  { %v1728_v52 = vpop.eup %1727 }
 0x4a0   :  { %384 = vrot.lane.b32.xlu0 %v1728_v52, %s1780_s11 }
 0x512   :  { %v385_v53 = vpop.permute.xlu0 %384 }
 0x513   :  { %v387_v54 = vmul.f32 %v1726_v40, %v385_v53 }
 0x515   :  { %392 = vrot.lane.b32.xlu1 %v387_v54, %s1781_s3  ;;  %v388_v19 = vadd.f32 %v387_v54, %v1874_v30 }
 0x587   :  { %v393_v61 = vpop.permute.xlu1 %392 }
 0x588   :  { %1535 = vmatmul.mubr.msk.f32.vlgmr.msra.gmra.mrb[8].mxu0 %vm186_vm3, %v393_v61 }
 0x589   :  { %1662 = vmatpush3.bf16.msra.mxu0 %v1827_v4  ;;  %1556 = vmatprep.mubr.msk.f32.mxu0 %vm1778_vm2, %v1779_v8 }
 0x58a   :  { %1663 = vmatprep.subr.bf16.mxu0 %v1777_v0 }
 0x58d   :  { %1665 = vmatpush3.bf16.msra.mxu0 %v1848_v10 }
 0x58e   :  { %1672 = vmatprep.subr.bf16.mxu0 %v1777_v0 }
 0x65b   :  { %v462_v63 = vpop.f32.mrb[8].mxu0 }
 0x65c   :  { %v466_v1 = vadd.f32 %v462_v63, %v149_v62  ;;  %v1536_v2 = vpop.f32.mrb[9].mxu0 }
 0x65e   :  { %1729 = vtanh.f32 %v466_v1  ;;  %v1384_v5 = vmul.f32 -1.442695, %v466_v1  ;;  %v164_v1 = vadd.f32 %v1916_v57, %v1868_v12 }
 0x660   :  { %1731 = vpow2.f32 %v1384_v5 }
 0x668   :  { %v1730_v3 = vpop.eup %1729 }
 0x669   :  { %476 = vrot.lane.b32.xlu0 %v1730_v3, %s1780_s11 }
 0x66a   :  { %v1732_v6 = vpop.eup %1731 }
 0x66b   :  { %v470_v7 = vadd.f32 1.0, %v1732_v6 }
 0x66d   :  { %1733 = vrcp.f32 %v470_v7 }
 0x677   :  { %v1734_v9 = vpop.eup %1733 }
 0x678   :  { %v474_v14 = vmul.f32 %v1734_v9, %v381_v45 }
 0x6db   :  { %v477_v11 = vpop.permute.xlu0 %476 }
 0x6dc   :  { %v479_v13 = vmul.f32 %v1734_v9, %v477_v11 }
 0x6de   :  { %481 = vrot.lane.b32.xlu1 %v479_v13, %s1780_s11 }
 0x750   :  { %v482_v15 = vpop.permute.xlu1 %481 }
 0x751   :  { %v484_v16 = vadd.f32 %v482_v15, %v474_v14 }
 0x753   :  { %1735 = vtanh.f32 %v484_v16 }
 0x75d   :  { %v1736_v17 = vpop.eup %1735 }
 0x75e   :  { %487 = vrot.lane.b32.xlu0 %v1736_v17, %s1780_s11 }
 0x7d0   :  { %v488_v18 = vpop.permute.xlu0 %487 }
 0x7d1   :  { %v490_v20 = vmul.f32 %v1734_v9, %v488_v18 }
 0x7d3   :  { %v491_v21 = vadd.f32 %v490_v20, %v388_v19  ;;  %495 = vrot.lane.b32.xlu1 %v490_v20, %s1781_s3 }
 0x845   :  { %v496_v22 = vpop.permute.xlu1 %495 }
 0x846   :  { %1546 = vmatmul.mubr.msk.f32.vlgmr.msra.gmra.mrb[4].mxu1 %vm186_vm3, %v496_v22 }
 0x847   :  { %1668 = vmatpush3.bf16.msra.mxu1 %v1827_v4  ;;  %1567 = vmatprep.mubr.msk.f32.mxu1 %vm1778_vm2, %v1779_v8 }
 0x848   :  { %1669 = vmatprep.subr.bf16.mxu1 %v1777_v0 }
 0x84b   :  { %1671 = vmatpush3.bf16.msra.mxu1 %v1848_v10 }
 0x84c   :  { %1678 = vmatprep.subr.bf16.mxu1 %v1777_v0 }
 0x919   :  { %v565_v24 = vpop.f32.mrb[4].mxu1 }
 0x91a   :  { %v569_v25 = vadd.f32 %v565_v24, %v154_v23  ;;  %v1547_v26 = vpop.f32.mrb[5].mxu1 }
 0x91c   :  { %1737 = vtanh.f32 %v569_v25  ;;  %v1386_v28 = vmul.f32 -1.442695, %v569_v25 }
 0x91e   :  { %1739 = vpow2.f32 %v1386_v28 }
 0x926   :  { %v1738_v27 = vpop.eup %1737 }
 0x927   :  { %579 = vrot.lane.b32.xlu0 %v1738_v27, %s1780_s11 }
 0x928   :  { %v1740_v29 = vpop.eup %1739 }
 0x929   :  { %v573_v30 = vadd.f32 1.0, %v1740_v29 }
 0x92b   :  { %1741 = vrcp.f32 %v573_v30 }
 0x935   :  { %v1742_v31 = vpop.eup %1741 }
 0x936   :  { %v577_v34 = vmul.f32 %v1742_v31, %v484_v16 }
 0x999   :  { %v580_v32 = vpop.permute.xlu0 %579 }
 0x99a   :  { %v582_v33 = vmul.f32 %v1742_v31, %v580_v32 }
 0x99c   :  { %584 = vrot.lane.b32.xlu1 %v582_v33, %s1780_s11 }
 0xa0e   :  { %v585_v35 = vpop.permute.xlu1 %584 }
 0xa0f   :  { %v587_v36 = vadd.f32 %v585_v35, %v577_v34 }
 0xa11   :  { %1743 = vtanh.f32 %v587_v36 }
 0xa1b   :  { %v1744_v37 = vpop.eup %1743 }
 0xa1c   :  { %590 = vrot.lane.b32.xlu0 %v1744_v37, %s1780_s11 }
 0xa8e   :  { %v591_v38 = vpop.permute.xlu0 %590 }
 0xa8f   :  { %v593_v39 = vmul.f32 %v1742_v31, %v591_v38 }
 0xa91   :  { %v594_v40 = vadd.f32 %v593_v39, %v491_v21  ;;  %598 = vrot.lane.b32.xlu1 %v593_v39, %s1781_s3  ;;  %v169_v21 = vadd.f32 %v1868_v12, %v1922_v60  ;;  %v174_v39 = vadd.f32 %v1920_v59, %v1868_v12 }
 0xb03   :  { %v599_v41 = vpop.permute.xlu1 %598 }
 0xb04   :  { %1557 = vmatmul.mubr.msk.f32.vlgmr.msra.gmra.mrb[10].mxu0 %vm186_vm3, %v599_v41 }
 0xb05   :  { %1674 = vmatpush3.bf16.msra.mxu0 %v1827_v4  ;;  %1578 = vmatprep.mubr.msk.f32.mxu0 %vm1778_vm2, %v1779_v8 }
 0xb06   :  { %1675 = vmatprep.subr.bf16.mxu0 %v1777_v0 }
 0xb09   :  { %1677 = vmatpush3.bf16.msra.mxu0 %v1848_v10 }
 0xb0a   :  { %1684 = vmatprep.subr.bf16.mxu0 %v1777_v0 }
 0xbd7   :  { %v668_v43 = vpop.f32.mrb[10].mxu0 }
 0xbd8   :  { %v672_v44 = vadd.f32 %v668_v43, %v159_v42  ;;  %v1558_v45 = vpop.f32.mrb[11].mxu0 }
 0xbda   :  { %1745 = vtanh.f32 %v672_v44  ;;  %v1388_v47 = vmul.f32 -1.442695, %v672_v44 }
 0xbdc   :  { %1747 = vpow2.f32 %v1388_v47 }
 0xbe4   :  { %v1746_v46 = vpop.eup %1745 }
 0xbe5   :  { %682 = vrot.lane.b32.xlu0 %v1746_v46, %s1780_s11 }
 0xbe6   :  { %v1748_v48 = vpop.eup %1747 }
 0xbe7   :  { %v676_v49 = vadd.f32 1.0, %v1748_v48 }
 0xbe9   :  { %1749 = vrcp.f32 %v676_v49 }
 0xbf3   :  { %v1750_v50 = vpop.eup %1749 }
 0xbf4   :  { %v680_v53 = vmul.f32 %v1750_v50, %v587_v36 }
 0xc57   :  { %v683_v51 = vpop.permute.xlu0 %682 }
 0xc58   :  { %v685_v52 = vmul.f32 %v1750_v50, %v683_v51 }
 0xc5a   :  { %687 = vrot.lane.b32.xlu1 %v685_v52, %s1780_s11  ;;  %v1008_v52 = vld [vmem:[%s2090_s4] sm:$0xff] }
 0xccc   :  { %v688_v54 = vpop.permute.xlu1 %687 }
 0xccd   :  { %v690_v55 = vadd.f32 %v688_v54, %v680_v53  ;;  %v1009_v53 = vld [vmem:[%s2090_s4 + $0x8] sm:$0xff]  ;;  %v1397_v54 = vld [vmem:[%s2090_s4 + $0x20] sm:$0xff] }
 0xccf   :  { %1751 = vtanh.f32 %v690_v55 }
 0xcd9   :  { %v1752_v56 = vpop.eup %1751 }
 0xcda   :  { %693 = vrot.lane.b32.xlu0 %v1752_v56, %s1780_s11  ;;  %v1398_v56 = vld [vmem:[%s2090_s4 + $0x28] sm:$0xff] }
 0xd4c   :  { %v694_v58 = vpop.permute.xlu0 %693 }
 0xd4d   :  { %v696_v61 = vmul.f32 %v1750_v50, %v694_v58  ;;  %v1010_v58 = vld [vmem:[%s2090_s4 + $0x10] sm:$0xff] }
 0xd4f   :  { %v697_v62 = vadd.f32 %v696_v61, %v594_v40  ;;  %701 = vrot.lane.b32.xlu1 %v696_v61, %s1781_s3  ;;  %v1011_v61 = vld [vmem:[%s2090_s4 + $0x18] sm:$0xff] }
 0xdc1   :  { %v702_v63 = vpop.permute.xlu1 %701 }
 0xdc2   :  { %1568 = vmatmul.mubr.msk.f32.vlgmr.msra.gmra.mrb[6].mxu1 %vm186_vm3, %v702_v63  ;;  %v1399_v63 = vld [vmem:[%s2090_s4 + $0x30] sm:$0xff] }
 0xdc3   :  { %1680 = vmatpush3.bf16.msra.mxu1 %v1827_v4  ;;  %1589 = vmatprep.mubr.msk.f32.mxu1 %vm1778_vm2, %v1779_v8 }
 0xdc4   :  { %1681 = vmatprep.subr.bf16.mxu1 %v1777_v0 }
 0xdc7   :  { %1683 = vmatpush3.bf16.msra.mxu1 %v1848_v10 }
 0xdc8   :  { %1690 = vmatprep.subr.bf16.mxu1 %v1777_v0 }
 0xe95   :  { %v771_v2 = vpop.f32.mrb[6].mxu1 }
 0xe96   :  { %v775_v3 = vadd.f32 %v771_v2, %v164_v1  ;;  %v1569_v5 = vpop.f32.mrb[7].mxu1  ;;  %v1400_v1 = vld [vmem:[%s2090_s4 + $0x38] sm:$0xff]  ;;  %v1688_v2 = vpack.c.bf16 %v1011_v61, %v1010_v58 }
 0xe98   :  { %1753 = vtanh.f32 %v775_v3  ;;  %v1390_v4 = vmul.f32 -1.442695, %v775_v3  ;;  %v1694_v3 = vpack.c.bf16 %v1400_v1, %v1399_v63 }
 0xe9a   :  { %1755 = vpow2.f32 %v1390_v4 }
 0xea2   :  { %v1754_v6 = vpop.eup %1753 }
 0xea3   :  { %785 = vrot.lane.b32.xlu0 %v1754_v6, %s1780_s11 }
 0xea4   :  { %v1756_v7 = vpop.eup %1755 }
 0xea5   :  { %v779_v9 = vadd.f32 1.0, %v1756_v7 }
 0xea7   :  { %1757 = vrcp.f32 %v779_v9 }
 0xeb1   :  { %v1758_v11 = vpop.eup %1757 }
 0xeb2   :  { %v783_v14 = vmul.f32 %v1758_v11, %v690_v55  ;;  %v1685_v55 = vpack.c.bf16 %v1009_v53, %v1008_v52 }
 0xf15   :  { %v786_v13 = vpop.permute.xlu0 %785 }
 0xf16   :  { %v788_v10 = vmul.f32 %v1758_v11, %v786_v13 }
 0xf18   :  { %790 = vrot.lane.b32.xlu1 %v788_v10, %s1780_s11  ;;  %v1405_v10 = vld [vmem:[%s2090_s4 + $0x40] sm:$0xff] }
 0xf8a   :  { %v791_v15 = vpop.permute.xlu1 %790 }
 0xf8b   :  { %v793_v57 = vadd.f32 %v791_v15, %v783_v14  ;;  %v1406_v14 = vld [vmem:[%s2090_s4 + $0x48] sm:$0xff]  ;;  %v1413_v15 = vld [vmem:[%s2090_s4 + $0x60] sm:$0xff] }
 0xf8d   :  { %1759 = vtanh.f32 %v793_v57 }
 0xf97   :  { %v1760_v16 = vpop.eup %1759 }
 0xf98   :  { %796 = vrot.lane.b32.xlu0 %v1760_v16, %s1780_s11  ;;  %v1697_v16 = vpack.c.bf16 %v1406_v14, %v1405_v10 }
0x100a   :  { %v797_v17 = vpop.permute.xlu0 %796 }
0x100b   :  { %v799_v18 = vmul.f32 %v1758_v11, %v797_v17  ;;  %v1407_v17 = vld [vmem:[%s2090_s4 + $0x50] sm:$0xff] }
0x100d   :  { %v800_v19 = vadd.f32 %v799_v18, %v697_v62  ;;  %804 = vrot.lane.b32.xlu1 %v799_v18, %s1781_s3  ;;  %v1691_v62 = vpack.c.bf16 %v1398_v56, %v1397_v54  ;;  %v1408_v18 = vld [vmem:[%s2090_s4 + $0x58] sm:$0xff] }
0x107f   :  { %v805_v20 = vpop.permute.xlu1 %804 }
0x1080   :  { %1579 = vmatmul.mubr.msk.f32.vlgmr.msra.gmra.mrb[12].mxu0 %vm186_vm3, %v805_v20 }
0x1081   :  { %1600 = vmatprep.mubr.msk.f32.mxu0 %vm1778_vm2, %v1779_v8  ;;  %1686 = vmatpush3.bf16.msra.mxu0 %v1685_v55 }
0x1082   :  { %1687 = vmatprep.subr.bf16.mxu0 %v1777_v0 }
0x1085   :  { %1689 = vmatpush3.bf16.msra.mxu0 %v1688_v2 }
0x1086   :  { %1696 = vmatprep.subr.bf16.mxu0 %v1777_v0 }
0x1153   :  { %v874_v22 = vpop.f32.mrb[12].mxu0 }
0x1154   :  { %v878_v23 = vadd.f32 %v874_v22, %v169_v21  ;;  %v1580_v24 = vpop.f32.mrb[13].mxu0  ;;  %v1415_v21 = vld [vmem:[%s2090_s4 + $0x70] sm:$0xff]  ;;  %v1416_v22 = vld [vmem:[%s2090_s4 + $0x78] sm:$0xff] }
0x1155   :  { %v1700_v24 = vpack.c.bf16 %v1408_v18, %v1407_v17 }
0x1156   :  { %1761 = vtanh.f32 %v878_v23  ;;  %v1392_v26 = vmul.f32 -1.442695, %v878_v23 }
0x1158   :  { %1763 = vpow2.f32 %v1392_v26 }
0x1160   :  { %v1762_v25 = vpop.eup %1761 }
0x1161   :  { %888 = vrot.lane.b32.xlu0 %v1762_v25, %s1780_s11  ;;  %v1706_v25 = vpack.c.bf16 %v1416_v22, %v1415_v21 }
0x1162   :  { %v1764_v27 = vpop.eup %1763 }
0x1163   :  { %v882_v28 = vadd.f32 1.0, %v1764_v27 }
0x1165   :  { %1765 = vrcp.f32 %v882_v28  ;;  %v1395_v28 = vld [vmem:[%s2091_s5] ss:$0 sm:$0xff] }
0x116f   :  { %v1766_v29 = vpop.eup %1765 }
0x1170   :  { %v886_v32 = vmul.f32 %v1766_v29, %v793_v57  ;;  %v1414_v57 = vld [vmem:[%s2090_s4 + $0x68] sm:$0xff] }
0x1171   :  { %v1703_v20 = vpack.c.bf16 %v1414_v57, %v1413_v15 }
0x11d3   :  { %v889_v30 = vpop.permute.xlu0 %888 }
0x11d4   :  { %v891_v31 = vmul.f32 %v1766_v29, %v889_v30 }
0x11d6   :  { %893 = vrot.lane.b32.xlu1 %v891_v31, %s1780_s11 }
0x1248   :  { %v894_v33 = vpop.permute.xlu1 %893 }
0x1249   :  { %v896_v60 = vadd.f32 %v894_v33, %v886_v32 }
0x124b   :  { %1767 = vtanh.f32 %v896_v60 }
0x1255   :  { %v1768_v34 = vpop.eup %1767 }
0x1256   :  { %899 = vrot.lane.b32.xlu0 %v1768_v34, %s1780_s11 }
0x12c8   :  { %v900_v35 = vpop.permute.xlu0 %899 }
0x12c9   :  { %v902_v36 = vmul.f32 %v1766_v29, %v900_v35  ;;  %v1418_v35 = vld [vmem:[%s2091_s5 + $0x3] ss:$0 sm:$0xff] }
0x12cb   :  { %v903_v37 = vadd.f32 %v902_v36, %v800_v19  ;;  %907 = vrot.lane.b32.xlu1 %v902_v36, %s1781_s3 }
0x133d   :  { %v908_v38 = vpop.permute.xlu1 %907 }
0x133e   :  { %1590 = vmatmul.mubr.msk.f32.vlgmr.msra.gmra.mrb[8].mxu1 %vm186_vm3, %v908_v38 }
0x133f   :  { %1611 = vmatprep.mubr.msk.f32.mxu1 %vm1778_vm2, %v1779_v8  ;;  %1692 = vmatpush3.bf16.msra.mxu1 %v1691_v62 }
0x1340   :  { %1693 = vmatprep.subr.bf16.mxu1 %v1777_v0 }
0x1343   :  { %1695 = vmatpush3.bf16.msra.mxu1 %v1694_v3 }
0x1344   :  { %1702 = vmatprep.subr.bf16.mxu1 %v1777_v0 }
0x1411   :  { %v977_v40 = vpop.f32.mrb[8].mxu1 }
0x1412   :  { %v981_v41 = vadd.f32 %v977_v40, %v174_v39  ;;  %v1591_v42 = vpop.f32.mrb[9].mxu1 }
0x1414   :  { %1769 = vtanh.f32 %v981_v41  ;;  %v1394_v44 = vmul.f32 -1.442695, %v981_v41 }
0x1416   :  { %1771 = vpow2.f32 %v1394_v44 }
0x141e   :  { %v1770_v43 = vpop.eup %1769 }
0x141f   :  { %991 = vrot.lane.b32.xlu0 %v1770_v43, %s1780_s11 }
0x1420   :  { %v1772_v45 = vpop.eup %1771 }
0x1421   :  { %v985_v46 = vadd.f32 1.0, %v1772_v45 }
0x1423   :  { %1773 = vrcp.f32 %v985_v46 }
0x142d   :  { %v1774_v47 = vpop.eup %1773 }
0x142e   :  { %v989_v50 = vmul.f32 %v1774_v47, %v896_v60  ;;  %v1410_v60 = vld [vmem:[%s2091_s5 + $0x2] ss:$0 sm:$0xff] }
0x1491   :  { %v992_v48 = vpop.permute.xlu0 %991 }
0x1492   :  { %v994_v49 = vmul.f32 %v1774_v47, %v992_v48 }
0x1494   :  { %996 = vrot.lane.b32.xlu1 %v994_v49, %s1780_s11 }
0x1506   :  { %v997_v51 = vpop.permute.xlu1 %996 }
0x1507   :  { %v999_v12 = vadd.f32 %v997_v51, %v989_v50 }
0x1509   :  { %1775 = vtanh.f32 %v999_v12 }
0x1513   :  { %v1776_v59 = vpop.eup %1775 }
0x1514   :  { %1002 = vrot.lane.b32.xlu0 %v1776_v59, %s1780_s11 }
0x1586   :  { %v1003_v5 = vpop.permute.xlu0 %1002 }
0x1587   :  { %v1005_v6 = vmul.f32 %v1774_v47, %v1003_v5 }
0x1589   :  { %v1006_v4 = vadd.f32 %v1005_v6, %v903_v37 }
0x158b   :  { %v1007_v7 = vmul.f32 0.125, %v1006_v4 }
0x158d   :  { %1020 = vrot.lane.b32.xlu1 %v1007_v7, %s1781_s3  ;;  %v1109_v9 = vrot.slane %v1007_v7, 2  ;;  %v1199_v11 = vrot.slane %v1007_v7, 4  ;;  %v1289_v13 = vrot.slane %v1007_v7, 6 }
0x158f   :  { %1110 = vrot.lane.b32.xlu0 %v1109_v9, %s1781_s3 }
0x1591   :  { %1200 = vrot.lane.b32.xlu1 %v1199_v11, %s1781_s3 }
0x1593   :  { %1290 = vrot.lane.b32.xlu0 %v1289_v13, %s1781_s3 }
0x15ff   :  { %v1021_v19 = vpop.permute.xlu1 %1020 }
0x1600   :  { %1601 = vmatmul.mubr.msk.f32.vlgmr.msra.gmra.mrb[14].mxu0 %vm186_vm3, %v1021_v19 }
0x1601   :  { %1698 = vmatpush3.bf16.msra.mxu0 %v1697_v16  ;;  %v1111_v23 = vpop.permute.xlu0 %1110  ;;  %1622 = vmatprep.mubr.msk.f32.mxu0 %vm1778_vm2, %v1779_v8 }
0x1602   :  { %1612 = vmatmul.mubr.msk.f32.vlgmr.msra.gmra.mrb[10].mxu1 %vm186_vm3, %v1111_v23  ;;  %1699 = vmatprep.subr.bf16.mxu0 %v1777_v0 }
0x1603   :  { %1704 = vmatpush3.bf16.msra.mxu1 %v1703_v20  ;;  %1633 = vmatprep.mubr.msk.f32.mxu1 %vm1778_vm2, %v1779_v8  ;;  %v1201_v26 = vpop.permute.xlu1 %1200  ;;  %v1402_v8 = vld [vmem:[%s2091_s5 + $0x1] ss:$0 sm:$0xff] }
0x1604   :  { %1705 = vmatprep.subr.bf16.mxu1 %v1777_v0 }
0x1605   :  { %1701 = vmatpush3.bf16.msra.mxu0 %v1700_v24  ;;  %v1291_v27 = vpop.permute.xlu0 %1290 }
0x1607   :  { %1707 = vmatpush3.bf16.msra.mxu1 %v1706_v25 }
0x1608   :  { %1623 = vmatmul.mubr.msk.f32.vlgmr.msra.gmra.mrb[16].mxu0 %vm186_vm3, %v1201_v26 }
0x160a   :  { %1634 = vmatmul.mubr.msk.f32.vlgmr.msra.gmra.mrb[12].mxu1 %vm186_vm3, %v1291_v27 }
0x16d3   :  { %v1090_v29 = vpop.f32.mrb[14].mxu0 }
0x16d4   :  { %v1091_v30 = vadd.f32 %v1395_v28, %v1090_v29  ;;  %v1602_v0 = vpop.f32.mrb[15].mxu0 }
0x16d5   :  { %v1180_v31 = vpop.f32.mrb[10].mxu1 }
0x16d6   :  { %1095 = vst.msk [vmem:[%s2092_s6] sm:$0x3] %vm1094_vm4, %v1091_v30  ;;  %v1181_v32 = vadd.f32 %v1402_v8, %v1180_v31  ;;  %v1613_v33 = vpop.f32.mrb[11].mxu1 }
0x16d8   :  { %1404 = vst.msk [vmem:[%s2092_s6 + $0x2] sm:$0x3] %vm1094_vm4, %v1181_v32 }
0x16db   :  { %v1270_v34 = vpop.f32.mrb[16].mxu0 }
0x16dc   :  { %v1271_v36 = vadd.f32 %v1410_v60, %v1270_v34  ;;  %v1624_v37 = vpop.f32.mrb[17].mxu0 }
0x16dd   :  { %v1360_v38 = vpop.f32.mrb[12].mxu1 }
0x16de   :  { %1412 = vst.msk [vmem:[%s2092_s6 + $0x4] sm:$0x3] %vm1094_vm4, %v1271_v36  ;;  %v1361_v39 = vadd.f32 %v1418_v35, %v1360_v38  ;;  %v1635_v40 = vpop.f32.mrb[13].mxu1 }
0x16e0   :  { %1420 = vst.msk [vmem:[%s2092_s6 + $0x6] sm:$0x3] %vm1094_vm4, %v1361_v39 }

</bundles_post_ra>
